<compile_context>
chip_gen: v5e
topology: v5e:2x2
jax: 0.10.0
libtpu: 0.0.40
codegen_flags: <defaults>
</compile_context>

<pallas_src>
import math

import jax
import jax.numpy as jnp
import numpy as np
from jax import lax
from jax.experimental import pallas as pl
from jax.experimental.pallas import tpu as pltpu


def _round_up(v, mult):
    return ((v + mult - 1) // mult) * mult


def _row_chunks(n_rows, max_chunk):
    """Static (offset, size) row chunks covering [0, n_rows)."""
    out, off = [], 0
    while off < n_rows:
        size = min(max_chunk, n_rows - off)
        out.append((off, size))
        off += size
    return out


def _make_sinkhorn_kernel(n, m, n_pad, m_pad, tile_n, epsilon, iterations,
                          threshold):
    # a = ones(n)/n, b = ones(m)/m  -> log(a + 1e-8), log(b + 1e-8) are constants.
    log_a = float(math.log(1.0 / n + 1e-8))
    log_b = float(math.log(1.0 / m + 1e-8))
    eps = float(epsilon)
    inv_eps = 1.0 / eps
    thr = float(threshold)
    mask_rows = n_pad > n
    mask_cols = m_pad > m
    NEG_BIG = -1e30  # "log-domain -inf" for padded entries (finite to avoid nan).
    chunks = _row_chunks(n_pad, tile_n)

    def kernel(x_ref, yT_ref, cost_ref, pi_ref, pi_slab_ref, copy_sem):
        x = x_ref[...]    # (n_pad, d_pad) f32, zero-padded
        yT = yT_ref[...]  # (d_pad, m_pad) f32, zero-padded, already transposed

        # ground_metric = 'l2':  C[i,j] = ||x_i||^2 + ||y_j||^2 - 2 x_i . y_j (MXU)
        x_sq = jnp.sum(x * x, axis=1, keepdims=True)              # (n_pad, 1)
        y_sq = jnp.sum(yT * yT, axis=0, keepdims=True)            # (1, m_pad)
        xy = jnp.dot(x, yT, preferred_element_type=jnp.float32)   # (n_pad, m_pad)
        # TODO(synk): optionally cast x/yT to bf16 for this one-time matmul.
        # negC_eps = -C/eps computed once; C itself is never kept live.
        negC_eps = (x_sq + y_sq - 2.0 * xy) * (-inv_eps)

        # Push padded rows/cols to -inf-ish so exp() -> 0 there and they never
        # influence the LSEs, pi, or the cost.  Two sequential where() calls
        # avoid materializing an (n_pad, m_pad) bool tile.
        row_valid = None
        col_valid = None
        if mask_rows:
            row_valid = lax.broadcasted_iota(jnp.int32, (n_pad, 1), 0) < n
            negC_eps = jnp.where(row_valid, negC_eps, NEG_BIG)
        if mask_cols:
            col_valid = lax.broadcasted_iota(jnp.int32, (1, m_pad), 1) < m
            negC_eps = jnp.where(col_valid, negC_eps, NEG_BIG)

        # Hoisted out of the loop (JAX does not CSE broadcasts inside loops).
        ones_m = jnp.ones((m_pad, 1), jnp.float32)

        # Carry u/eps (column) and v/eps (row).  Cancellation identities:
        #   u_new/eps = log_a - lse_row(negC_eps + v/eps)
        #   v_new/eps = log_b - lse_col(negC_eps + u_new/eps)
        def body(carry):
            i, u_eps, v_eps, _ = carry

            # Row logsumexp (lane reduction); the exp-sum runs on the MXU.
            T1 = negC_eps + v_eps                                  # (n_pad, m_pad)
            row_max = jnp.max(T1, axis=1, keepdims=True)           # (n_pad, 1)
            expT1 = jnp.exp(T1 - row_max)
            row_sum = jnp.dot(expT1, ones_m,
                              preferred_element_type=jnp.float32)  # (n_pad, 1)
            u_new = log_a - (row_max + jnp.log(row_sum))           # (n_pad, 1)
            if mask_rows:
                u_new = jnp.where(row_valid, u_new, 0.0)
            du = u_new - u_eps

            # Column logsumexp (sublane reduction on XLU).
            T2 = negC_eps + u_new                                  # (n_pad, m_pad)
            col_max = jnp.max(T2, axis=0, keepdims=True)           # (1, m_pad)
            expT2 = jnp.exp(T2 - col_max)
            col_sum = jnp.sum(expT2, axis=0, keepdims=True)        # (1, m_pad)
            v_new = log_b - (col_max + jnp.log(col_sum))           # (1, m_pad)
            if mask_cols:
                v_new = jnp.where(col_valid, v_new, 0.0)
            dv = v_new - v_eps

            # Same metric as the module: sum|du| + sum|dv| in original units.
            mean_diff = eps * (jnp.sum(jnp.abs(du)) + jnp.sum(jnp.abs(dv)))
            return i + 1, u_new, v_new, mean_diff

        def cond(carry):
            i, _, _, md = carry
            return jnp.logical_and(i < iterations, md >= thr)

        carry0 = (jnp.int32(0),
                  jnp.zeros((n_pad, 1), jnp.float32),
                  jnp.zeros((1, m_pad), jnp.float32),
                  jnp.float32(1e30))
        _, u_eps, v_eps, _ = lax.while_loop(cond, body, carry0)

        # Tail: build pi in row slabs in a small VMEM scratch, DMA each slab to
        # the HBM output, and accumulate cost = -eps * sum(pi * negC_eps)
        # (exact for valid entries; padded entries give exactly 0 since pi=0).
        partials = []
        for off, size in chunks:                      # static Python unroll
            negc_slab = negC_eps[off:off + size, :]
            u_slab = u_eps[off:off + size, :]
            pi_slab = jnp.exp(negc_slab + u_slab + v_eps)          # (size, m_pad)
            pi_slab_ref[:size, :] = pi_slab
            cp = pltpu.make_async_copy(pi_slab_ref.at[:size, :],
                                       pi_ref.at[off:off + size, :],
                                       copy_sem)
            cp.start()
            cp.wait()
            partials.append(jnp.sum(pi_slab * negc_slab, axis=(0, 1),
                                    keepdims=True))
        total = partials[0]
        for p in partials[1:]:
            total = total + p
        cost_ref[...] = (-eps) * total                             # (1, 1)

    return kernel


def sinkhorn_solver(x, y, epsilon=0.1, iterations=100, threshold=0.1):
    """Pallas equivalent of SinkhornSolver(epsilon, iterations, 'l2').forward(x, y).

    Returns (cost, pi) with cost a scalar f32 and pi of shape (num_x, num_y).
    """
    # TODO(synk): the optional `weight` argument (pi = weight @ exp(K)) and the
    # 'weighted_l2' / 'cosine' / 'l1' ground metrics are not implemented, and
    # batched 3-D inputs are out of scope (reference forward assumes 2-D).
    x = jnp.asarray(x, jnp.float32)
    y = jnp.asarray(y, jnp.float32)
    n, d = x.shape
    m, d2 = y.shape
    assert d == d2

    # Lane-dense padding: m, d -> multiples of 128; n -> multiple of 8.
    n_pad = _round_up(max(n, 8), 8)
    m_pad = _round_up(max(m, 128), 128)
    d_pad = _round_up(max(d, 128), 128)
    tile_n = min(n_pad, 512)   # row-slab size for the pi writeback scratch

    x_p = jnp.zeros((n_pad, d_pad), jnp.float32).at[:n, :d].set(x)
    yT_p = jnp.zeros((d_pad, m_pad), jnp.float32).at[:d, :m].set(y.T)

    kernel = _make_sinkhorn_kernel(n, m, n_pad, m_pad, tile_n,
                                   epsilon, iterations, threshold)

    # VMEM budget: negC_eps persistent + ~3 live (n_pad, m_pad) loop temps
    # + x / yT + pi row-slab scratch.  pi itself lives in HBM.
    est_bytes = 4 * (4 * n_pad * m_pad + (n_pad + m_pad) * d_pad
                     + tile_n * m_pad) + (1 << 20)
    try:
        vmem_cap = int(pltpu.get_tpu_info().vmem_capacity_bytes)
    except Exception:
        vmem_cap = 64 * (1 << 20)   # conservative: v7x per-TensorCore VMEM
    # Always pass a limit (>= 32 MiB) so v5e's 16 MiB default never bites, and
    # cap safely below the physical per-core capacity (never 100 MiB on v7x).
    vmem_limit = int(min(max(est_bytes * 5 // 4, 32 * (1 << 20)),
                         vmem_cap - 4 * (1 << 20)))
    # TODO(synk): for problems whose resident set exceeds vmem_limit
    # (n_pad*m_pad ~ 1.4k^2 on v7x, ~2k^2 on v5e/v6e), switch to an
    # HBM-resident negC_eps streamed in (n_pad, TILE_M) slabs per half
    # iteration (emit_pipeline / double-buffered make_async_copy), and batch
    # independent problems over a "parallel" grid axis to use both v7x cores.

    cost2d, pi_full = pl.pallas_call(
        kernel,
        out_shape=(jax.ShapeDtypeStruct((1, 1), jnp.float32),
                   jax.ShapeDtypeStruct((n_pad, m_pad), jnp.float32)),
        in_specs=[pl.BlockSpec(memory_space=pltpu.MemorySpace.VMEM),
                  pl.BlockSpec(memory_space=pltpu.MemorySpace.VMEM)],
        out_specs=(pl.BlockSpec(memory_space=pltpu.MemorySpace.VMEM),
                   pl.BlockSpec(memory_space=pl.ANY)),
        scratch_shapes=[pltpu.VMEM((tile_n, m_pad), jnp.float32),
                        pltpu.SemaphoreType.DMA(())],
        compiler_params=pltpu.CompilerParams(vmem_limit_bytes=vmem_limit),
    )(x_p, yT_p)
    return cost2d[0, 0], pi_full[:n, :m]


def _reference(x, y, epsilon=0.1, iterations=100, threshold=0.1):
    """NumPy reference mirroring the PyTorch forward (weight=None, 'l2', real break)."""
    x = np.asarray(x, np.float32)
    y = np.asarray(y, np.float32)
    n, m = x.shape[0], y.shape[0]
    C = np.sum((x[:, None, :] - y[None, :, :]) ** 2, axis=-1)
    log_a = np.log(1.0 / n + 1e-8)
    log_b = np.log(1.0 / m + 1e-8)
    u = np.zeros((n,), np.float32)
    v = np.zeros((m,), np.float32)

    def lse(K, axis):
        mx = K.max(axis=axis, keepdims=True)
        return (mx + np.log(np.sum(np.exp(K - mx), axis=axis, keepdims=True))).squeeze(axis)

    for _ in range(iterations):
        u0, v0 = u, v
        K = (-C + u[:, None] + v[None, :]) / epsilon
        u = epsilon * (log_a - lse(K, 1)) + u
        K = (-C + u[:, None] + v[None, :]) / epsilon
        v = epsilon * (log_b - lse(K, 0)) + v
        mean_diff = np.sum(np.abs(u - u0)) + np.sum(np.abs(v - v0))
        if mean_diff < threshold:
            break
    K = (-C + u[:, None] + v[None, :]) / epsilon
    pi = np.exp(K)
    return np.sum(pi * C), pi


if __name__ == "__main__":
    key = jax.random.PRNGKey(0)
    kx, ky = jax.random.split(key)
    N, M, D = 8, 8, 32
    x = jax.random.normal(kx, (N, D), dtype=jnp.float32)
    y = jax.random.normal(ky, (M, D), dtype=jnp.float32)

    cost, pi = sinkhorn_solver(x, y, epsilon=0.1, iterations=100)
    jax.block_until_ready((cost, pi))

    ref_cost, ref_pi = _reference(np.asarray(x), np.asarray(y),
                                  epsilon=0.1, iterations=100)
    np.testing.assert_allclose(np.asarray(pi), ref_pi, rtol=2e-2, atol=2e-4)
    np.testing.assert_allclose(np.asarray(cost), ref_cost, rtol=2e-2, atol=1e-3)

    print("KERNEL_OK")
</pallas_src>

<mosaic_0001>
module attributes {stable_mosaic.version = 11 : i64} {
  func.func @kernel(%arg0: memref<8x128xf32, #tpu.memory_space<vmem>>, %arg1: memref<128x128xf32, #tpu.memory_space<vmem>>, %arg2: memref<1x1xf32, #tpu.memory_space<vmem>>, %arg3: memref<8x128xf32, #tpu.memory_space<any>>, %arg4: memref<8x128xf32, #tpu.memory_space<vmem>>, %arg5: memref<!tpu.dma_semaphore, #tpu.memory_space<semaphore_mem>>) attributes {dimension_semantics = [], scalar_prefetch = 0 : i64, scratch_operands = 2 : i64, tpu.core_type = #tpu.core_type<tc>} {
    %c0 = arith.constant 0 : index
    %c0_0 = arith.constant 0 : index
    %0 = vector.load %arg0[%c0, %c0_0] : memref<8x128xf32, #tpu.memory_space<vmem>>, vector<8x128xf32>
    %c0_1 = arith.constant 0 : index
    %c0_2 = arith.constant 0 : index
    %1 = vector.load %arg1[%c0_1, %c0_2] : memref<128x128xf32, #tpu.memory_space<vmem>>, vector<128x128xf32>
    %2 = arith.mulf %0, %0 : vector<8x128xf32>
    %cst = arith.constant dense<0.000000e+00> : vector<8xf32>
    %3 = vector.multi_reduction <add>, %2, %cst [1] : vector<8x128xf32> to vector<8xf32>
    %4 = vector.shape_cast %3 : vector<8xf32> to vector<8x1xf32>
    %5 = arith.mulf %1, %1 : vector<128x128xf32>
    %cst_3 = arith.constant dense<0.000000e+00> : vector<128xf32>
    %6 = vector.multi_reduction <add>, %5, %cst_3 [0] : vector<128x128xf32> to vector<128xf32>
    %7 = vector.shape_cast %6 : vector<128xf32> to vector<1x128xf32>
    %cst_4 = arith.constant dense<0.000000e+00> : vector<8x128xf32>
    %8 = tpu.matmul %0, %1, %cst_4 {dimension_numbers = #tpu.dot_dimension_numbers<[1], [0], [0], [1], [0, 0, 1, 1], [], []>} : vector<8x128xf32>, vector<128x128xf32>, vector<8x128xf32> -> vector<8x128xf32>
    %9 = vector.broadcast %4 : vector<8x1xf32> to vector<8x128xf32>
    %10 = vector.broadcast %7 : vector<1x128xf32> to vector<8x128xf32>
    %11 = arith.addf %9, %10 : vector<8x128xf32>
    %cst_5 = arith.constant 2.000000e+00 : f32
    %12 = vector.broadcast %cst_5 : f32 to vector<8x128xf32>
    %13 = arith.mulf %12, %8 : vector<8x128xf32>
    %14 = arith.subf %11, %13 : vector<8x128xf32>
    %cst_6 = arith.constant -1.000000e+01 : f32
    %15 = vector.broadcast %cst_6 : f32 to vector<8x128xf32>
    %16 = arith.mulf %14, %15 : vector<8x128xf32>
    %17 = tpu.iota {dimensions = array<i32: 1>} : vector<1x128xi32>
    %c8_i32 = arith.constant 8 : i32
    %18 = vector.broadcast %c8_i32 : i32 to vector<1x128xi32>
    %19 = arith.cmpi slt, %17, %18 : vector<1x128xi32>
    %cst_7 = arith.constant -1.000000e+30 : f32
    %20 = vector.shape_cast %19 : vector<1x128xi1> to vector<1x128xi1>
    %21 = vector.broadcast %20 : vector<1x128xi1> to vector<8x128xi1>
    %22 = vector.broadcast %cst_7 : f32 to vector<8x128xf32>
    %23 = arith.select %21, %16, %22 : vector<8x128xi1>, vector<8x128xf32>
    %cst_8 = arith.constant 1.000000e+00 : f32
    %24 = vector.broadcast %cst_8 : f32 to vector<128x1xf32>
    %cst_9 = arith.constant 0.000000e+00 : f32
    %25 = vector.broadcast %cst_9 : f32 to vector<8x1xf32>
    %cst_10 = arith.constant 0.000000e+00 : f32
    %26 = vector.broadcast %cst_10 : f32 to vector<1x128xf32>
    %c0_i32 = arith.constant 0 : i32
    %cst_11 = arith.constant 1.000000e+30 : f32
    %27:4 = scf.while (%arg6 = %c0_i32, %arg7 = %25, %arg8 = %26, %arg9 = %cst_11) : (i32, vector<8x1xf32>, vector<1x128xf32>, f32) -> (i32, vector<8x1xf32>, vector<1x128xf32>, f32) {
      %c100_i32 = arith.constant 100 : i32
      %47 = arith.cmpi slt, %arg6, %c100_i32 : i32
      %cst_26 = arith.constant 1.000000e-01 : f32
      %48 = arith.cmpf oge, %arg9, %cst_26 : f32
      %49 = arith.andi %47, %48 : i1
      scf.condition(%49) %arg6, %arg7, %arg8, %arg9 : i32, vector<8x1xf32>, vector<1x128xf32>, f32
    } do {
    ^bb0(%arg6: i32, %arg7: vector<8x1xf32>, %arg8: vector<1x128xf32>, %arg9: f32):
      %47 = vector.broadcast %arg8 : vector<1x128xf32> to vector<8x128xf32>
      %48 = arith.addf %23, %47 : vector<8x128xf32>
      %cst_26 = arith.constant dense<0xFF800000> : vector<8xf32>
      %49 = vector.multi_reduction <maximumf>, %48, %cst_26 [1] : vector<8x128xf32> to vector<8xf32>
      %50 = vector.shape_cast %49 : vector<8xf32> to vector<8x1xf32>
      %51 = vector.broadcast %50 : vector<8x1xf32> to vector<8x128xf32>
      %52 = arith.subf %48, %51 : vector<8x128xf32>
      %53 = math.exp %52 : vector<8x128xf32>
      %cst_27 = arith.constant dense<0.000000e+00> : vector<8x1xf32>
      %54 = tpu.matmul %53, %24, %cst_27 {dimension_numbers = #tpu.dot_dimension_numbers<[1], [0], [0], [1], [0, 0, 1, 1], [], []>} : vector<8x128xf32>, vector<128x1xf32>, vector<8x1xf32> -> vector<8x1xf32>
      %55 = math.log %54 : vector<8x1xf32>
      %56 = arith.addf %50, %55 : vector<8x1xf32>
      %cst_28 = arith.constant -2.07944155 : f32
      %57 = vector.broadcast %cst_28 : f32 to vector<8x1xf32>
      %58 = arith.subf %57, %56 : vector<8x1xf32>
      %59 = arith.subf %58, %arg7 : vector<8x1xf32>
      %60 = vector.broadcast %58 : vector<8x1xf32> to vector<8x128xf32>
      %61 = arith.addf %23, %60 : vector<8x128xf32>
      %cst_29 = arith.constant dense<0xFF800000> : vector<128xf32>
      %62 = vector.multi_reduction <maximumf>, %61, %cst_29 [0] : vector<8x128xf32> to vector<128xf32>
      %63 = vector.shape_cast %62 : vector<128xf32> to vector<1x128xf32>
      %64 = vector.broadcast %63 : vector<1x128xf32> to vector<8x128xf32>
      %65 = arith.subf %61, %64 : vector<8x128xf32>
      %66 = math.exp %65 : vector<8x128xf32>
      %cst_30 = arith.constant dense<0.000000e+00> : vector<128xf32>
      %67 = vector.multi_reduction <add>, %66, %cst_30 [0] : vector<8x128xf32> to vector<128xf32>
      %68 = vector.shape_cast %67 : vector<128xf32> to vector<1x128xf32>
      %69 = math.log %68 : vector<1x128xf32>
      %70 = arith.addf %63, %69 : vector<1x128xf32>
      %cst_31 = arith.constant -2.07944155 : f32
      %71 = vector.broadcast %cst_31 : f32 to vector<1x128xf32>
      %72 = arith.subf %71, %70 : vector<1x128xf32>
      %cst_32 = arith.constant 0.000000e+00 : f32
      %73 = vector.broadcast %cst_32 : f32 to vector<1x128xf32>
      %74 = arith.select %19, %72, %73 : vector<1x128xi1>, vector<1x128xf32>
      %75 = arith.subf %74, %arg8 : vector<1x128xf32>
      %76 = math.absf %59 : vector<8x1xf32>
      %77 = vector.shape_cast %76 : vector<8x1xf32> to vector<1x8x1xf32>
      %cst_33 = arith.constant dense<0.000000e+00> : vector<1xf32>
      %78 = vector.multi_reduction <add>, %77, %cst_33 [1, 2] : vector<1x8x1xf32> to vector<1xf32>
      %79 = vector.shape_cast %78 : vector<1xf32> to vector<1x1x1xf32>
      %80 = vector.extract %79[0, 0, 0] : f32 from vector<1x1x1xf32>
      %81 = math.absf %75 : vector<1x128xf32>
      %82 = vector.shape_cast %81 : vector<1x128xf32> to vector<1x1x128xf32>
      %cst_34 = arith.constant dense<0.000000e+00> : vector<1xf32>
      %83 = vector.multi_reduction <add>, %82, %cst_34 [1, 2] : vector<1x1x128xf32> to vector<1xf32>
      %84 = vector.shape_cast %83 : vector<1xf32> to vector<1x1x1xf32>
      %85 = vector.extract %84[0, 0, 0] : f32 from vector<1x1x1xf32>
      %86 = arith.addf %80, %85 : f32
      %cst_35 = arith.constant 1.000000e-01 : f32
      %87 = arith.mulf %cst_35, %86 : f32
      %c1_i32 = arith.constant 1 : i32
      %88 = arith.addi %arg6, %c1_i32 : i32
      scf.yield %88, %58, %74, %87 : i32, vector<8x1xf32>, vector<1x128xf32>, f32
    }
    %28 = vector.broadcast %27#1 : vector<8x1xf32> to vector<8x128xf32>
    %29 = arith.addf %23, %28 : vector<8x128xf32>
    %30 = vector.broadcast %27#2 : vector<1x128xf32> to vector<8x128xf32>
    %31 = arith.addf %29, %30 : vector<8x128xf32>
    %32 = math.exp %31 : vector<8x128xf32>
    %c0_12 = arith.constant 0 : index
    %c0_13 = arith.constant 0 : index
    %33 = vector.load %arg4[%c0_12, %c0_13] : memref<8x128xf32, #tpu.memory_space<vmem>>, vector<8x128xf32>
    tpu.vector_store %arg4[%c0_12, %c0_13], %32 {strides = array<i32>} : memref<8x128xf32, #tpu.memory_space<vmem>>, vector<8x128xf32>,
    %c0_i32_14 = arith.constant 0 : i32
    %c0_i32_15 = arith.constant 0 : i32
    %34 = tpu.memref_slice %arg4[%c0_i32_14, %c0_i32_15] : memref<8x128xf32, #tpu.memory_space<vmem>> -> memref<8x128xf32, #tpu.memory_space<vmem>>
    %c0_i32_16 = arith.constant 0 : i32
    %c0_i32_17 = arith.constant 0 : i32
    %35 = tpu.memref_slice %arg3[%c0_i32_16, %c0_i32_17] : memref<8x128xf32, #tpu.memory_space<any>> -> memref<8x128xf32, #tpu.memory_space<any>>
    tpu.enqueue_dma source(%34 : memref<8x128xf32, #tpu.memory_space<vmem>>) target(%35 : memref<8x128xf32, #tpu.memory_space<any>>) target_semaphore(%arg5 : memref<!tpu.dma_semaphore, #tpu.memory_space<semaphore_mem>>)
    %c0_i32_18 = arith.constant 0 : i32
    %c0_i32_19 = arith.constant 0 : i32
    %36 = tpu.memref_slice %arg4[%c0_i32_18, %c0_i32_19] : memref<8x128xf32, #tpu.memory_space<vmem>> -> memref<8x128xf32, #tpu.memory_space<vmem>>
    %c0_i32_20 = arith.constant 0 : i32
    %c0_i32_21 = arith.constant 0 : i32
    %37 = tpu.memref_slice %arg3[%c0_i32_20, %c0_i32_21] : memref<8x128xf32, #tpu.memory_space<any>> -> memref<8x128xf32, #tpu.memory_space<any>>
    tpu.wait_dma2 semaphore(%arg5 : memref<!tpu.dma_semaphore, #tpu.memory_space<semaphore_mem>>) src(%36 : memref<8x128xf32, #tpu.memory_space<vmem>>) dst(%37 : memref<8x128xf32, #tpu.memory_space<any>>)
    %38 = arith.mulf %32, %23 : vector<8x128xf32>
    %39 = vector.shape_cast %38 : vector<8x128xf32> to vector<1x8x128xf32>
    %cst_22 = arith.constant dense<0.000000e+00> : vector<1xf32>
    %40 = vector.multi_reduction <add>, %39, %cst_22 [1, 2] : vector<1x8x128xf32> to vector<1xf32>
    %41 = vector.shape_cast %40 : vector<1xf32> to vector<1x1x1xf32>
    %42 = vector.extract %41[0, 0, 0] : f32 from vector<1x1x1xf32>
    %43 = vector.broadcast %42 : f32 to vector<1x1xf32>
    %cst_23 = arith.constant -1.000000e-01 : f32
    %44 = vector.broadcast %cst_23 : f32 to vector<1x1xf32>
    %45 = arith.mulf %44, %43 : vector<1x1xf32>
    %c0_24 = arith.constant 0 : index
    %c0_25 = arith.constant 0 : index
    %46 = vector.load %arg2[%c0_24, %c0_25] : memref<1x1xf32, #tpu.memory_space<vmem>>, vector<1x1xf32>
    tpu.vector_store %arg2[%c0_24, %c0_25], %45 {strides = array<i32>} : memref<1x1xf32, #tpu.memory_space<vmem>>, vector<1x1xf32>,
    return
  }
}

</mosaic_0001>

<bundles_post_ra>
// kernel: tpu_custom_call.1
= control target key start
LH: loop header
LB: loop body
LE: loop exit
PB: predicated region body
PF: predicated region fallthrough
CT: control target
= control target key end

     0   :  { %9 = vsyncpa [#allocation5], 0  ;;  %s572_s0 = inlined_call_operand.hbm [shape: f32[8,128], index: 0, kind: input, shape index: {}]   ;;  %s573_s1 = inlined_call_operand.hbm [shape: f32[128,128], index: 1, kind: input, shape index: {}]   ;;  %s574_s2 = inlined_call_operand.hbm [shape: f32[1,1], index: 2, kind: output, shape index: {0}]   ;;  %s575_s3 = inlined_call_operand.hbm [shape: f32[8,128], index: 3, kind: output, shape index: {1}]  }
   0x1   :  { %10 = vsyncpa [#allocation8], 0 }
   0x2   :  { %11 = vsyncpa [#allocation6], 0  ;;  %s17_s14 = sshll.u32 %s572_s0, 4  ;;  %s485_s15 = smov [#allocation4]   ;;  %s18_s14 = int_to_ptr.hbm [resolvable:$true] %s17_s14 }
   0x3   :  { %s19_s16 = sshll.u32 %s485_s15, 4  ;;  %s27_s19 = sshll.u32 %s573_s1, 4  ;;  %s20_s16 = int_to_ptr.vmem [resolvable:$true] %s19_s16  ;;  %s28_s19 = int_to_ptr.hbm [resolvable:$true] %s27_s19 }
   0x4   :  { %22 = dma.hbm_to_vmem [thread:$0]  %s18_s14, 128, %s20_s16, [#allocation5]  }
   0x5   :  { %s486_s20 = smov [#allocation7]   ;;  %s487_s22 = smov 128  }
   0x6   :  { %s29_s21 = sshll.u32 %s486_s20, 4  ;;  %s488_s23 = smov 8   ;;  %s30_s21 = int_to_ptr.vmem [resolvable:$true] %s29_s21 }
   0x7   :  { %35 = dma.hbm_to_vmem [thread:$0]  %s28_s19, 2048, %s30_s21, [#allocation8], %s487_s22, %s487_s22, %s488_s23  }
   0x8   :  { %465 = dma.done.wait [#allocation5], 128  }
   0x9   :  { %466 = vsyncadd [#allocation5], 4294967168 }
   0xa   :  { %467 = dma.done.wait [#allocation8], 2048  }
   0xb   :  { %468 = vsyncadd [#allocation8], 4294965248  ;;  %v520_v0 = vld [vmem:[#allocation7 + $0x78] sm:$0xff]  ;;  %v59_v1 = vld [vmem:[#allocation7 + $0x70] sm:$0xff]  ;;  %v125_v56 = vlaneseq  ;;  %s536_s0 = smov 0  }
   0xc   :  { %101 = vmatpush.msra.mxu0 %v520_v0  ;;  %v58_v2 = vld [vmem:[#allocation7 + $0x68] sm:$0xff]  ;;  %v57_v3 = vld [vmem:[#allocation7 + $0x60] sm:$0xff]  ;;  %v47_v5 = vld [vmem:[#allocation7 + $0x10] sm:$0xff]  ;;  %v78_v43 = vmul.f32 %v59_v1, %v59_v1  ;;  %v79_v45 = vmul.f32 %v520_v0, %v520_v0  ;;  %v532_v0 = vmov 0.0  }
   0xd   :  { %v46_v4 = vld [vmem:[#allocation7 + $0x8] sm:$0xff]  ;;  %v45_v7 = vld [vmem:[#allocation7] sm:$0xff]  ;;  %v44_v8 = vld [vmem:[#allocation4] sm:$0xff]  ;;  %v66_v10 = vmul.f32 %v47_v5, %v47_v5  ;;  %v76_v39 = vmul.f32 %v57_v3, %v57_v3  ;;  %v77_v41 = vmul.f32 %v58_v2, %v58_v2  ;;  %v525_v59 = vand.u32 127, %v125_v56 }
   0xe   :  { %102 = vmatpush.msra.mxu0 %v59_v1  ;;  %v65_v6 = vmul.f32 %v46_v4, %v46_v4  ;;  %v56_v9 = vld [vmem:[#allocation7 + $0x58] sm:$0xff]  ;;  %v64_v11 = vmul.f32 %v45_v7, %v45_v7  ;;  %v61_v12 = vmul.f32 %v44_v8, %v44_v8  ;;  %v55_v14 = vld [vmem:[#allocation7 + $0x50] sm:$0xff]  ;;  %v49_v17 = vld [vmem:[#allocation7 + $0x20] sm:$0xff]  ;;  %v534_v1 = vmov 0.0  }
   0xf   :  { %v48_v13 = vld [vmem:[#allocation7 + $0x18] sm:$0xff]  ;;  %v54_v18 = vld [vmem:[#allocation7 + $0x48] sm:$0xff]  ;;  %v68_v19 = vmul.f32 %v49_v17, %v49_v17  ;;  %v53_v22 = vld [vmem:[#allocation7 + $0x40] sm:$0xff]  ;;  %v74_v37 = vmul.f32 %v55_v14, %v55_v14  ;;  %v75_v38 = vmul.f32 %v56_v9, %v56_v9  ;;  %vm127_vm0 = vcmp.lt.s32.totalorder %v525_v59, 8 }
  0x10   :  { %103 = vmatpush.msra.mxu0 %v58_v2  ;;  %v67_v15 = vmul.f32 %v48_v13, %v48_v13  ;;  %v80_v16 = vadd.f32 %v65_v6, %v64_v11  ;;  %62 = vadd.xlane.f32.xlu0 %v61_v12  ;;  %v50_v21 = vld [vmem:[#allocation7 + $0x28] sm:$0xff]  ;;  %v51_v25 = vld [vmem:[#allocation7 + $0x30] sm:$0xff]  ;;  %v52_v26 = vld [vmem:[#allocation7 + $0x38] sm:$0xff]  ;;  %v72_v31 = vmul.f32 %v53_v22, %v53_v22 }
  0x11   :  { %v69_v23 = vmul.f32 %v50_v21, %v50_v21  ;;  %v70_v27 = vmul.f32 %v51_v25, %v51_v25  ;;  %v71_v29 = vmul.f32 %v52_v26, %v52_v26  ;;  %v73_v33 = vmul.f32 %v54_v18, %v54_v18 }
  0x12   :  { %104 = vmatpush.msra.mxu0 %v57_v3  ;;  %v81_v20 = vadd.f32 %v80_v16, %v66_v10 }
  0x14   :  { %105 = vmatpush.msra.mxu0 %v56_v9  ;;  %v82_v24 = vadd.f32 %v81_v20, %v67_v15 }
  0x16   :  { %106 = vmatpush.msra.mxu0 %v55_v14  ;;  %v83_v28 = vadd.f32 %v82_v24, %v68_v19 }
  0x18   :  { %107 = vmatpush.msra.mxu0 %v54_v18  ;;  %v84_v30 = vadd.f32 %v83_v28, %v69_v23 }
  0x1a   :  { %108 = vmatpush.msra.mxu0 %v53_v22  ;;  %v85_v32 = vadd.f32 %v84_v30, %v70_v27 }
  0x1c   :  { %109 = vmatpush.msra.mxu0 %v52_v26  ;;  %v86_v34 = vadd.f32 %v85_v32, %v71_v29 }
  0x1e   :  { %110 = vmatpush.msra.mxu0 %v51_v25  ;;  %v87_v35 = vadd.f32 %v86_v34, %v72_v31 }
  0x20   :  { %111 = vmatpush.msra.mxu0 %v50_v21  ;;  %v88_v36 = vadd.f32 %v87_v35, %v73_v33 }
  0x22   :  { %112 = vmatpush.msra.mxu0 %v49_v17  ;;  %v89_v40 = vadd.f32 %v88_v36, %v74_v37 }
  0x24   :  { %113 = vmatpush.msra.mxu0 %v48_v13  ;;  %v90_v42 = vadd.f32 %v89_v40, %v75_v38 }
  0x26   :  { %114 = vmatpush.msra.mxu0 %v47_v5  ;;  %v91_v44 = vadd.f32 %v90_v42, %v76_v39 }
  0x28   :  { %115 = vmatpush.msra.mxu0 %v46_v4  ;;  %v92_v46 = vadd.f32 %v91_v44, %v77_v41 }
  0x2a   :  { %116 = vmatpush.msra.mxu0 %v45_v7  ;;  %v93_v47 = vadd.f32 %v92_v46, %v78_v43 }
  0x2b   :  { %117 = vmatmul.f32.vlgmr.msra.gmra.mxu0 %v44_v8 }
  0x2c   :  { %v94_v48 = vadd.f32 %v93_v47, %v79_v45 }
  0x2e   :  { %v95_v49 = vrot.slane %v94_v48, 4 }
  0x30   :  { %v96_v50 = vadd.f32 %v95_v49, %v94_v48 }
  0x32   :  { %v97_v51 = vrot.slane %v96_v50, 2 }
  0x34   :  { %v98_v52 = vadd.f32 %v97_v51, %v96_v50 }
  0x36   :  { %v99_v53 = vrot.slane %v98_v52, 1 }
  0x38   :  { %v100_v54 = vadd.f32 %v99_v53, %v98_v52 }
  0x83   :  { %v63_v55 = vpop.xlane.xlu0 %62 }
  0x84   :  { %v121_v57 = vadd.f32 %v100_v54, %v63_v55 }
  0xa8   :  { %v118_v58 = vpop.f32.mrf.mxu0 }
  0xa9   :  { %v122_v60 = vmul.f32 2.0, %v118_v58 }
  0xab   :  { %v123_v61 = vsub.f32 %v121_v57, %v122_v60 }
  0xad   :  { %v124_v62 = vmul.f32 -10.0, %v123_v61 }
  0xaf   :  { %v530_v63 = vsel %vm127_vm0, %v124_v62, -1e+30 }
  0xb0 LB: > { %v489_v2 = vmov 1.0   ;;  %v142_v3 = vadd.f32 %v475_v0, %v530_v63  ;;  %v490_v8 = vmov 0   ;;  %vm201_vm1 = vcmask 7168   ;;  %s226_s0 = sadd.s32 1, %s483_s0   ;;  %s483_s0 = sphi %s536_s0, %s226_s0   ;;  %v479_v1 = vphi %v534_v1, %v577_v1   ;;  %v475_v0 = vphi %v532_v0, %v576_v0  }
  0xb1   : > { %148 = vmatpush.msra.mxu0 %v489_v2  ;;  %345 = vset.pattern.permute.xlu0 %v490_v8  ;;  %vm213_vm2 = vcmask 1040384   ;;  %p136_p0 = scmp.lt.s32.totalorder %s226_s0, 100 }
  0xb2   : > { %143 = vmax.xlane.f32.xlu0 %v142_v3 }
  0xb3   : > { %149 = vmatpush.msra.mxu0 %v489_v2 }
  0xb5   : > { %150 = vmatpush.msra.mxu0 %v489_v2 }
  0xb7   : > { %151 = vmatpush.msra.mxu0 %v489_v2 }
  0xb9   : > { %152 = vmatpush.msra.mxu0 %v489_v2 }
  0xbb   : > { %153 = vmatpush.msra.mxu0 %v489_v2 }
  0xbd   : > { %154 = vmatpush.msra.mxu0 %v489_v2 }
  0xbf   : > { %155 = vmatpush.msra.mxu0 %v489_v2 }
  0xc1   : > { %156 = vmatpush.msra.mxu0 %v489_v2 }
  0xc3   : > { %157 = vmatpush.msra.mxu0 %v489_v2 }
  0xc5   : > { %158 = vmatpush.msra.mxu0 %v489_v2 }
  0xc7   : > { %159 = vmatpush.msra.mxu0 %v489_v2 }
  0xc9   : > { %160 = vmatpush.msra.mxu0 %v489_v2 }
  0xcb   : > { %161 = vmatpush.msra.mxu0 %v489_v2 }
  0xcd   : > { %162 = vmatpush.msra.mxu0 %v489_v2 }
  0xcf   : > { %163 = vmatpush.msra.mxu0 %v489_v2 }
 0x125   : > { %v144_v4 = vpop.xlane.xlu0 %143 }
 0x126   : > { %v145_v5 = vsub.f32 %v142_v3, %v144_v4 }
 0x128   : > { %v146_v6 = vmul.f32 1.442695, %v145_v5 }
 0x12a   : > { %346 = vpow2.f32 %v146_v6 }
 0x130   : > { %v347_v7 = vpop.eup %346 }
 0x131   : > { %164 = vmatmul.f32.vlgmr.msra.gmra.mxu0 %v347_v7 }
 0x1ae   : > { %v165_v9 = vpop.f32.mrf.mxu0 }
 0x1af   : > { %348 = vlog2.f32 %v165_v9 }
 0x1b5   : > { %v349_v10 = vpop.eup %348 }
 0x1b6   : > { %v169_v11 = vmul.f32 0.6931472, %v349_v10 }
 0x1b8   : > { %v170_v12 = vadd.f32 %v169_v11, %v144_v4 }
 0x1ba   : > { %v547_v13 = vsub.f32 -2.0794415, %v170_v12  }
 0x1bc   : > { %175 = vperm.xlu0 %345, %v547_v13   ;;  %v172_v14 = vsub.f32 %v547_v13, %v479_v1  ;;  %v577_v1 = vmov %v547_v13 }
 0x1be   : > { %v200_v15 = vand.u32 2147483647, %v172_v14 }
 0x1c0   : > { %v202_v16 = vsel %vm201_vm1, %v200_v15, 0.0 }
 0x1c1   : > { %203 = vadd.xlane.f32.xlu1 %v202_v16 }
 0x22e   : > { %v176_v17 = vpop.permute.xlu0 %175 }
 0x22f   : > { %v178_v18 = vadd.f32 %v176_v17, %v530_v63 }
 0x231   : > { %v179_v19 = vrot.slane %v178_v18, 4 }
 0x233   : > { %v180_v20 = vmax.f32 %v178_v18, %v179_v19 }
 0x234   : > { %v204_v21 = vpop.xlane.xlu1 %203 }
 0x235   : > { %v181_v22 = vrot.slane %v180_v20, 2  ;;  %v205_v23 = vrot.slane %v204_v21, 4 }
 0x237   : > { %v182_v24 = vmax.f32 %v180_v20, %v181_v22  ;;  %v206_v25 = vadd.f32 %v205_v23, %v204_v21 }
 0x239   : > { %v183_v26 = vrot.slane %v182_v24, 1  ;;  %v207_v27 = vrot.slane %v206_v25, 2 }
 0x23b   : > { %v184_v28 = vmax.f32 %v182_v24, %v183_v26  ;;  %v208_v29 = vadd.f32 %v207_v27, %v206_v25 }
 0x23d   : > { %v185_v30 = vsub.f32 %v178_v18, %v184_v28  ;;  %v209_v31 = vrot.slane %v208_v29, 1 }
 0x23f   : > { %v186_v32 = vmul.f32 1.442695, %v185_v30  ;;  %v210_v33 = vadd.f32 %v209_v31, %v208_v29 }
 0x241   : > { %350 = vpow2.f32 %v186_v32  ;;  %306 = vpush %v210_v33 }
 0x247   : > { %v351_v34 = vpop.eup %350 }
 0x248   : > { %v188_v35 = vrot.slane %v351_v34, 4 }
 0x24a   : > { %v189_v36 = vadd.f32 %v351_v34, %v188_v35 }
 0x24c   : > { %v190_v37 = vrot.slane %v189_v36, 2 }
 0x24e   : > { %v191_v38 = vadd.f32 %v190_v37, %v189_v36 }
 0x250   : > { %v192_v39 = vrot.slane %v191_v38, 1 }
 0x252   : > { %v193_v40 = vadd.f32 %v192_v39, %v191_v38 }
 0x254   : > { %352 = vlog2.f32 %v193_v40 }
 0x25a   : > { %v353_v41 = vpop.eup %352 }
 0x25b   : > { %v195_v42 = vmul.f32 0.6931472, %v353_v41 }
 0x25d   : > { %v196_v43 = vadd.f32 %v195_v42, %v184_v28 }
 0x25f   : > { %v197_v44 = vsub.f32 -2.0794415, %v196_v43 }
 0x261   : > { %v198_v45 = vsel %vm127_vm0, %v197_v44, 0.0  }
 0x262   : > { %v199_v46 = vsub.f32 %v198_v45, %v475_v0  ;;  %v576_v0 = vmov %v198_v45 }
 0x264   : > { %v212_v47 = vand.u32 2147483647, %v199_v46 }
 0x266   : > { %v214_v48 = vsel %vm213_vm2, %v212_v47, 0.0 }
 0x267   : > { %215 = vadd.xlane.f32.xlu1 %v214_v48 }
 0x272   : > { %s307_s1 = spop %306 }
 0x2da   : > { %v216_v49 = vpop.xlane.xlu1 %215 }
 0x2db   : > { %v217_v50 = vrot.slane %v216_v49, 4 }
 0x2dd   : > { %v218_v51 = vadd.f32 %v217_v50, %v216_v49 }
 0x2df   : > { %v219_v52 = vrot.slane %v218_v51, 2 }
 0x2e1   : > { %v220_v53 = vadd.f32 %v219_v52, %v218_v51 }
 0x2e3   : > { %v221_v54 = vrot.slane %v220_v53, 1 }
 0x2e5   : > { %v222_v55 = vadd.f32 %v221_v54, %v220_v53 }
 0x2e7   : > { %308 = vpush %v222_v55 }
 0x318   : > { %s309_s24 = spop %308 }
 0x319   : > { %s224_s25 = sadd.f32 %s309_s24, %s307_s1 }
 0x31b   : > { %s225_s26 = smul.f32 0.1, %s224_s25 }
 0x31d   : > { %p137_p1 = scmp.ge.f32.partialorder %s225_s26, 0.1 }
 0x31f   : > { %p138_p2 = pnand %p137_p1, %p136_p0 }
 0x320   :  { %v491_v56 = vmov (%p138_p2), 0   ;;  %s492_s27 = smov (%p138_p2), [#allocation2]   ;;  %s246_s4 = sshll.u32 (%p138_p2), %s575_s3, 4  ;;  %s247_s4 = int_to_ptr.hbm [resolvable:$true] %s246_s4 }
 0x321   :  { %141 = sbr.rel (!%p138_p2) target bundleno = 176 (0xb0), region = 47  ;;  %354 = vset.pattern.permute.xlu0 (%p138_p2), %v491_v56  ;;  %s244_s28 = sshll.u32 (%p138_p2), %s492_s27, 4  ;;  %s245_s28 = int_to_ptr.vmem [resolvable:$true] %s244_s28 }
 0x322   :  { %229 = vperm.xlu0 (%p138_p2), %354, %v547_v13  }
 0x394   :  { %v230_v57 = vpop.permute.xlu0 %229 }
 0x395   :  { %v232_v58 = vadd.f32 %v230_v57, %v530_v63 }
 0x397   :  { %v233_v60 = vadd.f32 %v232_v58, %v198_v45 }
 0x399   :  { %v234_v61 = vmul.f32 1.442695, %v233_v60 }
 0x39b   :  { %355 = vpow2.f32 %v234_v61 }
 0x3a1   :  { %v356_v62 = vpop.eup %355 }
 0x3a2   :  { %236 = vst [vmem:[#allocation2] sm:$0xff] %v356_v62  ;;  %v253_v59 = vmul.f32 %v356_v62, %v530_v63 }
 0x3a3   :  { %249 = dma.vmem_to_hbm [thread:$0]  %s245_s28, 128, %s247_s4, [#allocation3] }
 0x3a4   :  { %469 = dma.done.wait [#allocation3], 128 }
 0x3a5   :  { %470 = vsyncadd [#allocation3], 4294967168  ;;  %254 = vadd.xlane.f32.xlu0 %v253_v59  ;;  %s493_s5 = smov [#allocation9]   ;;  %s274_s8 = sshll.u32 %s574_s2, 4  ;;  %vm265_vm3 = vcmask 0   ;;  %s275_s8 = int_to_ptr.hbm [resolvable:$true] %s274_s8 }
 0x3a6   :  { %s272_s3 = sshll.u32 %s493_s5, 4  ;;  %s273_s3 = int_to_ptr.vmem [resolvable:$true] %s272_s3 }
 0x418   :  { %v255_v0 = vpop.xlane.xlu0 %254 }
 0x419   :  { %v256_v1 = vrot.slane %v255_v0, 4 }
 0x41b   :  { %v257_v2 = vadd.f32 %v256_v1, %v255_v0 }
 0x41d   :  { %v258_v3 = vrot.slane %v257_v2, 2 }
 0x41f   :  { %v259_v4 = vadd.f32 %v258_v3, %v257_v2 }
 0x421   :  { %v260_v5 = vrot.slane %v259_v4, 1 }
 0x423   :  { %v261_v6 = vadd.f32 %v260_v5, %v259_v4 }
 0x425   :  { %310 = vpush %v261_v6 }
 0x456   :  { %s311_s9 = spop %310 }
 0x457   :  { %v263_v7 = vstv %s311_s9 }
 0x458   :  { %v264_v63 = vmul.f32 -0.1, %v263_v7 }
 0x45a   :  { %266 = vst.msk [vmem:[#allocation9] sm:$0x1] %vm265_vm3, %v264_v63 }
 0x45b   :  { %277 = dma.vmem_to_hbm [thread:$0]  %s273_s3, 16, %s275_s8, [#allocation6]  }
 0x45c   :  { %471 = dma.done.wait [#allocation6], 16  }
 0x45d   :  { %472 = vsyncadd [#allocation6], 4294967280 }
 0x45e   :  { %282 = vsyncpa [#allocation5], 1 }
 0x45f   :  { %283 = vsyncpa [#allocation8], 1 }
 0x460   :  { %284 = vsyncpa [#allocation6], 1 }
 0x461   :  { %285 = vsyncmov [#allocation3] }
 0x464   :  { %s286_s10 = vpop.sfrf %285 }
 0x465   :  { %p305_p3 = scmp.ne.s32.totalorder %s286_s10, 0 }
 0x467   :  { %290 = shalt.err (%p305_p3)  }

</bundles_post_ra>
